<compile_context>
chip_gen: v7x
topology: tpu7x:2x2x1
jax: 0.10.0
libtpu: 0.0.40
codegen_flags: <defaults>
</compile_context>

<pallas_src>
import jax
import jax.numpy as jnp
from jax.experimental import pallas as pl
from jax.experimental.pallas import tpu as pltpu


def _decoder_kernel(x_ref, w6_ref, b6_ref, wc_ref, bc_ref, out_ref):
    """x_ref: (latent_dim, rows, 128) VMEM; out_ref: (output_dim, rows, 128) VMEM.
    w6_ref: (4, latent_dim), b6_ref: (4,), wc_ref: (output_dim, 4), bc_ref: (output_dim,)
    float32 in SMEM, read as scalars.  Batch occupies the (sublane, lane) axes, so every
    multiply-add is a scalar-splat VPU op on fully dense vregs; tanh goes to the EUP."""
    latent_dim = x_ref.shape[0]
    hidden = w6_ref.shape[0]          # 4
    out_dim = out_ref.shape[0]

    xs = [x_ref[k] for k in range(latent_dim)]            # latent_dim x (rows, 128)

    # fc6 + tanh:  h[j] = tanh(b6[j] + sum_k w6[k, j] * x[k])
    h = []
    for j in range(hidden):
        acc = xs[0] * w6_ref[j, 0] + b6_ref[j]
        for k in range(1, latent_dim):
            acc = acc + xs[k] * w6_ref[j, k]
        h.append(jnp.tanh(acc))

    # Collapsed fc7..fc10 (single affine map):  out[o] = bc[o] + sum_j wc[j, o] * h[j]
    for o in range(out_dim):
        acc = h[0] * wc_ref[o, 0] + bc_ref[o]
        for j in range(1, hidden):
            acc = acc + h[j] * wc_ref[o, j]
        out_ref[o] = acc.astype(out_ref.dtype)


def _collapse_tail(params):
    """Fold the activation-free chain fc7..fc10 into one (4, out) matrix + (1, out) bias."""
    wc = params["w7"] @ params["w8"] @ params["w9"] @ params["w10"]
    bc = (((params["b7"] @ params["w8"] + params["b8"]) @ params["w9"] + params["b9"])
          @ params["w10"] + params["b10"])
    return wc, bc


def decoder_forward_lane_dense(xt, params, *, max_batch_tile=32768,
                               out_dtype=jnp.float32):
    """Performance entry point.  xt: (latent_dim, B) -> (output_dim, B), lane-dense."""
    latent_dim, B = xt.shape
    out_dim = params["w10"].shape[1]

    wc, bc = _collapse_tail(params)
    w6t = params["w6"].T.astype(jnp.float32)            # (4, latent_dim)
    b6v = params["b6"].reshape(-1).astype(jnp.float32)  # (4,)
    wct = wc.T.astype(jnp.float32)                       # (out_dim, 4)
    bcv = bc.reshape(-1).astype(jnp.float32)             # (out_dim,)

    # Batch -> (rows, 128) lane geometry; tile over whole sublane rows.
    total_rows = -(-B // 128)
    max_rows = max(8, (max_batch_tile // 128) // 8 * 8)   # multiple of 8 sublanes
    if total_rows <= max_rows:
        rows_tile, num_tiles = total_rows, 1               # block == full dims -> legal
    else:
        rows_tile = max_rows
        num_tiles = -(-total_rows // rows_tile)
    padded_rows = rows_tile * num_tiles
    b_pad = padded_rows * 128

    if b_pad != B:
        xt = jnp.pad(xt, ((0, 0), (0, b_pad - B)))         # zero-pad ragged batch
    x3 = xt.reshape(latent_dim, padded_rows, 128)

    out3 = pl.pallas_call(
        _decoder_kernel,
        out_shape=jax.ShapeDtypeStruct((out_dim, padded_rows, 128), out_dtype),
        grid_spec=pltpu.PrefetchScalarGridSpec(
            num_scalar_prefetch=0,
            grid=(num_tiles,),
            in_specs=[
                pl.BlockSpec((latent_dim, rows_tile, 128), lambda i: (0, i, 0)),
                pl.BlockSpec(memory_space=pltpu.MemorySpace.SMEM),   # w6t
                pl.BlockSpec(memory_space=pltpu.MemorySpace.SMEM),   # b6
                pl.BlockSpec(memory_space=pltpu.MemorySpace.SMEM),   # wct
                pl.BlockSpec(memory_space=pltpu.MemorySpace.SMEM),   # bc
            ],
            out_specs=pl.BlockSpec((out_dim, rows_tile, 128), lambda i: (0, i, 0)),
        ),
        compiler_params=pltpu.CompilerParams(
            dimension_semantics=("parallel",),
        ),
    )(x3, w6t, b6v, wct, bcv)

    out = out3.reshape(out_dim, b_pad)
    if b_pad != B:
        out = out[:, :B]
    return out


def decoder_forward(x, params, *, max_batch_tile=32768, out_dtype=jnp.float32):
    """PyTorch-layout wrapper: x (B, latent_dim) -> (B, output_dim).
    Prefer decoder_forward_lane_dense, and call this under jit so the boundary
    transposes fuse with the producer/consumer instead of paying an extra HBM pass."""
    out_t = decoder_forward_lane_dense(
        jnp.asarray(x).T, params, max_batch_tile=max_batch_tile, out_dtype=out_dtype)
    return out_t.T


def init_decoder_params(key, latent_dim, output_dim):
    """Deterministic synthetic init mirroring nn.Linear shapes (stored transposed)."""
    dims = [latent_dim, 4, 8, 16, 32, output_dim]
    names = ["6", "7", "8", "9", "10"]
    params = {}
    for n, (din, dout) in zip(names, zip(dims[:-1], dims[1:])):
        key, kw, kb = jax.random.split(key, 3)
        bound = 1.0 / jnp.sqrt(din)
        params[f"w{n}"] = jax.random.uniform(
            kw, (din, dout), jnp.float32, minval=-bound, maxval=bound)
        params[f"b{n}"] = jax.random.uniform(
            kb, (1, dout), jnp.float32, minval=-bound, maxval=bound)
    return params


def decoder_ref(x, params):
    """Plain-JAX reference of the PyTorch forward (un-collapsed)."""
    h = jnp.tanh(x @ params["w6"] + params["b6"])
    h = h @ params["w7"] + params["b7"]
    h = h @ params["w8"] + params["b8"]
    h = h @ params["w9"] + params["b9"]
    return h @ params["w10"] + params["b10"]


if __name__ == "__main__":
    latent_dim = 3
    output_dim = 12

    key = jax.random.PRNGKey(0)
    kx1, kx2, kx3, kp = jax.random.split(key, 4)
    params = init_decoder_params(kp, latent_dim, output_dim)

    fwd = jax.jit(decoder_forward, static_argnames=("max_batch_tile", "out_dtype"))

    # Case 1: tiny ragged batch (B=16) -> zero-padded to one 128-lane row, single step.
    x_small = jax.random.normal(kx1, (16, latent_dim), dtype=jnp.float32)
    out_small = jax.block_until_ready(fwd(x_small, params))
    ref_small = decoder_ref(x_small, params)
    assert out_small.shape == ref_small.shape
    assert jnp.allclose(out_small, ref_small, atol=1e-4, rtol=1e-4), "small-batch mismatch"

    # Case 2: multi-tile path (B=2048 with 1024-element tiles -> 2 "parallel" grid
    # steps; same structure that shards large batches across both v7x TensorCores).
    x_big = jax.random.normal(kx2, (2048, latent_dim), dtype=jnp.float32)
    out_big = jax.block_until_ready(fwd(x_big, params, max_batch_tile=1024))
    ref_big = decoder_ref(x_big, params)
    assert out_big.shape == ref_big.shape
    assert jnp.allclose(out_big, ref_big, atol=1e-4, rtol=1e-4), "big-batch mismatch"

    # Case 3: lane-dense entry point (no wrapper transposes) + bf16 writeback option.
    x_ld = jax.random.normal(kx3, (512, latent_dim), dtype=jnp.float32)
    out_ld = jax.block_until_ready(
        decoder_forward_lane_dense(x_ld.T, params, out_dtype=jnp.bfloat16))
    ref_ld = decoder_ref(x_ld, params).T
    assert out_ld.shape == ref_ld.shape
    assert jnp.allclose(out_ld.astype(jnp.float32), ref_ld, atol=5e-2, rtol=5e-2), \
        "lane-dense/bf16 mismatch"

    print("KERNEL_OK")
</pallas_src>

<mosaic_0001>
module attributes {stable_mosaic.version = 11 : i64} {
  func.func @_decoder_kernel(%arg0: i32, %arg1: memref<3x1x128xf32, #tpu.memory_space<vmem>>, %arg2: memref<4x3xf32, #tpu.memory_space<smem>>, %arg3: memref<4xf32, #tpu.memory_space<smem>>, %arg4: memref<12x4xf32, #tpu.memory_space<smem>>, %arg5: memref<12xf32, #tpu.memory_space<smem>>, %arg6: memref<12x1x128xf32, #tpu.memory_space<vmem>>) attributes {dimension_semantics = [#tpu.dimension_semantics<parallel>], iteration_bounds = array<i64: 1>, scalar_prefetch = 0 : i64, scratch_operands = 0 : i64, tpu.core_type = #tpu.core_type<tc>, window_params = [{transform_indices = @transform_0, window_bounds = array<i64: 3, 1, 128>}, {transform_indices = @transform_1, window_bounds = array<i64: 4, 3>}, {transform_indices = @transform_2, window_bounds = array<i64: 4>}, {transform_indices = @transform_3, window_bounds = array<i64: 12, 4>}, {transform_indices = @transform_4, window_bounds = array<i64: 12>}, {transform_indices = @transform_5, window_bounds = array<i64: 12, 1, 128>}]} {
    %c0 = arith.constant 0 : index
    %c0_0 = arith.constant 0 : index
    %c0_1 = arith.constant 0 : index
    %0 = vector.load %arg1[%c0, %c0_0, %c0_1] : memref<3x1x128xf32, #tpu.memory_space<vmem>>, vector<1x1x128xf32>
    %1 = vector.shape_cast %0 : vector<1x1x128xf32> to vector<1x128xf32>
    %c1 = arith.constant 1 : index
    %c0_2 = arith.constant 0 : index
    %c0_3 = arith.constant 0 : index
    %2 = vector.load %arg1[%c1, %c0_2, %c0_3] : memref<3x1x128xf32, #tpu.memory_space<vmem>>, vector<1x1x128xf32>
    %3 = vector.shape_cast %2 : vector<1x1x128xf32> to vector<1x128xf32>
    %c2 = arith.constant 2 : index
    %c0_4 = arith.constant 0 : index
    %c0_5 = arith.constant 0 : index
    %4 = vector.load %arg1[%c2, %c0_4, %c0_5] : memref<3x1x128xf32, #tpu.memory_space<vmem>>, vector<1x1x128xf32>
    %5 = vector.shape_cast %4 : vector<1x1x128xf32> to vector<1x128xf32>
    %c0_6 = arith.constant 0 : index
    %c0_7 = arith.constant 0 : index
    %6 = memref.load %arg2[%c0_6, %c0_7] : memref<4x3xf32, #tpu.memory_space<smem>>
    %7 = vector.broadcast %6 : f32 to vector<1x128xf32>
    %8 = arith.mulf %1, %7 : vector<1x128xf32>
    %c0_8 = arith.constant 0 : index
    %9 = memref.load %arg3[%c0_8] : memref<4xf32, #tpu.memory_space<smem>>
    %10 = vector.broadcast %9 : f32 to vector<1x128xf32>
    %11 = arith.addf %8, %10 : vector<1x128xf32>
    %c0_9 = arith.constant 0 : index
    %c1_10 = arith.constant 1 : index
    %12 = memref.load %arg2[%c0_9, %c1_10] : memref<4x3xf32, #tpu.memory_space<smem>>
    %13 = vector.broadcast %12 : f32 to vector<1x128xf32>
    %14 = arith.mulf %3, %13 : vector<1x128xf32>
    %15 = arith.addf %11, %14 : vector<1x128xf32>
    %c0_11 = arith.constant 0 : index
    %c2_12 = arith.constant 2 : index
    %16 = memref.load %arg2[%c0_11, %c2_12] : memref<4x3xf32, #tpu.memory_space<smem>>
    %17 = vector.broadcast %16 : f32 to vector<1x128xf32>
    %18 = arith.mulf %5, %17 : vector<1x128xf32>
    %19 = arith.addf %15, %18 : vector<1x128xf32>
    %20 = math.tanh %19 : vector<1x128xf32>
    %c1_13 = arith.constant 1 : index
    %c0_14 = arith.constant 0 : index
    %21 = memref.load %arg2[%c1_13, %c0_14] : memref<4x3xf32, #tpu.memory_space<smem>>
    %22 = vector.broadcast %21 : f32 to vector<1x128xf32>
    %23 = arith.mulf %1, %22 : vector<1x128xf32>
    %c1_15 = arith.constant 1 : index
    %24 = memref.load %arg3[%c1_15] : memref<4xf32, #tpu.memory_space<smem>>
    %25 = vector.broadcast %24 : f32 to vector<1x128xf32>
    %26 = arith.addf %23, %25 : vector<1x128xf32>
    %c1_16 = arith.constant 1 : index
    %c1_17 = arith.constant 1 : index
    %27 = memref.load %arg2[%c1_16, %c1_17] : memref<4x3xf32, #tpu.memory_space<smem>>
    %28 = vector.broadcast %27 : f32 to vector<1x128xf32>
    %29 = arith.mulf %3, %28 : vector<1x128xf32>
    %30 = arith.addf %26, %29 : vector<1x128xf32>
    %c1_18 = arith.constant 1 : index
    %c2_19 = arith.constant 2 : index
    %31 = memref.load %arg2[%c1_18, %c2_19] : memref<4x3xf32, #tpu.memory_space<smem>>
    %32 = vector.broadcast %31 : f32 to vector<1x128xf32>
    %33 = arith.mulf %5, %32 : vector<1x128xf32>
    %34 = arith.addf %30, %33 : vector<1x128xf32>
    %35 = math.tanh %34 : vector<1x128xf32>
    %c2_20 = arith.constant 2 : index
    %c0_21 = arith.constant 0 : index
    %36 = memref.load %arg2[%c2_20, %c0_21] : memref<4x3xf32, #tpu.memory_space<smem>>
    %37 = vector.broadcast %36 : f32 to vector<1x128xf32>
    %38 = arith.mulf %1, %37 : vector<1x128xf32>
    %c2_22 = arith.constant 2 : index
    %39 = memref.load %arg3[%c2_22] : memref<4xf32, #tpu.memory_space<smem>>
    %40 = vector.broadcast %39 : f32 to vector<1x128xf32>
    %41 = arith.addf %38, %40 : vector<1x128xf32>
    %c2_23 = arith.constant 2 : index
    %c1_24 = arith.constant 1 : index
    %42 = memref.load %arg2[%c2_23, %c1_24] : memref<4x3xf32, #tpu.memory_space<smem>>
    %43 = vector.broadcast %42 : f32 to vector<1x128xf32>
    %44 = arith.mulf %3, %43 : vector<1x128xf32>
    %45 = arith.addf %41, %44 : vector<1x128xf32>
    %c2_25 = arith.constant 2 : index
    %c2_26 = arith.constant 2 : index
    %46 = memref.load %arg2[%c2_25, %c2_26] : memref<4x3xf32, #tpu.memory_space<smem>>
    %47 = vector.broadcast %46 : f32 to vector<1x128xf32>
    %48 = arith.mulf %5, %47 : vector<1x128xf32>
    %49 = arith.addf %45, %48 : vector<1x128xf32>
    %50 = math.tanh %49 : vector<1x128xf32>
    %c3 = arith.constant 3 : index
    %c0_27 = arith.constant 0 : index
    %51 = memref.load %arg2[%c3, %c0_27] : memref<4x3xf32, #tpu.memory_space<smem>>
    %52 = vector.broadcast %51 : f32 to vector<1x128xf32>
    %53 = arith.mulf %1, %52 : vector<1x128xf32>
    %c3_28 = arith.constant 3 : index
    %54 = memref.load %arg3[%c3_28] : memref<4xf32, #tpu.memory_space<smem>>
    %55 = vector.broadcast %54 : f32 to vector<1x128xf32>
    %56 = arith.addf %53, %55 : vector<1x128xf32>
    %c3_29 = arith.constant 3 : index
    %c1_30 = arith.constant 1 : index
    %57 = memref.load %arg2[%c3_29, %c1_30] : memref<4x3xf32, #tpu.memory_space<smem>>
    %58 = vector.broadcast %57 : f32 to vector<1x128xf32>
    %59 = arith.mulf %3, %58 : vector<1x128xf32>
    %60 = arith.addf %56, %59 : vector<1x128xf32>
    %c3_31 = arith.constant 3 : index
    %c2_32 = arith.constant 2 : index
    %61 = memref.load %arg2[%c3_31, %c2_32] : memref<4x3xf32, #tpu.memory_space<smem>>
    %62 = vector.broadcast %61 : f32 to vector<1x128xf32>
    %63 = arith.mulf %5, %62 : vector<1x128xf32>
    %64 = arith.addf %60, %63 : vector<1x128xf32>
    %65 = math.tanh %64 : vector<1x128xf32>
    %c0_33 = arith.constant 0 : index
    %c0_34 = arith.constant 0 : index
    %66 = memref.load %arg4[%c0_33, %c0_34] : memref<12x4xf32, #tpu.memory_space<smem>>
    %67 = vector.broadcast %66 : f32 to vector<1x128xf32>
    %68 = arith.mulf %20, %67 : vector<1x128xf32>
    %c0_35 = arith.constant 0 : index
    %69 = memref.load %arg5[%c0_35] : memref<12xf32, #tpu.memory_space<smem>>
    %70 = vector.broadcast %69 : f32 to vector<1x128xf32>
    %71 = arith.addf %68, %70 : vector<1x128xf32>
    %c0_36 = arith.constant 0 : index
    %c1_37 = arith.constant 1 : index
    %72 = memref.load %arg4[%c0_36, %c1_37] : memref<12x4xf32, #tpu.memory_space<smem>>
    %73 = vector.broadcast %72 : f32 to vector<1x128xf32>
    %74 = arith.mulf %35, %73 : vector<1x128xf32>
    %75 = arith.addf %71, %74 : vector<1x128xf32>
    %c0_38 = arith.constant 0 : index
    %c2_39 = arith.constant 2 : index
    %76 = memref.load %arg4[%c0_38, %c2_39] : memref<12x4xf32, #tpu.memory_space<smem>>
    %77 = vector.broadcast %76 : f32 to vector<1x128xf32>
    %78 = arith.mulf %50, %77 : vector<1x128xf32>
    %79 = arith.addf %75, %78 : vector<1x128xf32>
    %c0_40 = arith.constant 0 : index
    %c3_41 = arith.constant 3 : index
    %80 = memref.load %arg4[%c0_40, %c3_41] : memref<12x4xf32, #tpu.memory_space<smem>>
    %81 = vector.broadcast %80 : f32 to vector<1x128xf32>
    %82 = arith.mulf %65, %81 : vector<1x128xf32>
    %83 = arith.addf %79, %82 : vector<1x128xf32>
    %c0_42 = arith.constant 0 : index
    %c0_43 = arith.constant 0 : index
    %c0_44 = arith.constant 0 : index
    %84 = vector.load %arg6[%c0_42, %c0_43, %c0_44] : memref<12x1x128xf32, #tpu.memory_space<vmem>>, vector<1x1x128xf32>
    %85 = vector.shape_cast %84 : vector<1x1x128xf32> to vector<1x128xf32>
    %86 = vector.shape_cast %83 : vector<1x128xf32> to vector<1x1x128xf32>
    tpu.vector_store %arg6[%c0_42, %c0_43, %c0_44], %86 {strides = array<i32>} : memref<12x1x128xf32, #tpu.memory_space<vmem>>, vector<1x1x128xf32>,
    %c1_45 = arith.constant 1 : index
    %c0_46 = arith.constant 0 : index
    %87 = memref.load %arg4[%c1_45, %c0_46] : memref<12x4xf32, #tpu.memory_space<smem>>
    %88 = vector.broadcast %87 : f32 to vector<1x128xf32>
    %89 = arith.mulf %20, %88 : vector<1x128xf32>
    %c1_47 = arith.constant 1 : index
    %90 = memref.load %arg5[%c1_47] : memref<12xf32, #tpu.memory_space<smem>>
    %91 = vector.broadcast %90 : f32 to vector<1x128xf32>
    %92 = arith.addf %89, %91 : vector<1x128xf32>
    %c1_48 = arith.constant 1 : index
    %c1_49 = arith.constant 1 : index
    %93 = memref.load %arg4[%c1_48, %c1_49] : memref<12x4xf32, #tpu.memory_space<smem>>
    %94 = vector.broadcast %93 : f32 to vector<1x128xf32>
    %95 = arith.mulf %35, %94 : vector<1x128xf32>
    %96 = arith.addf %92, %95 : vector<1x128xf32>
    %c1_50 = arith.constant 1 : index
    %c2_51 = arith.constant 2 : index
    %97 = memref.load %arg4[%c1_50, %c2_51] : memref<12x4xf32, #tpu.memory_space<smem>>
    %98 = vector.broadcast %97 : f32 to vector<1x128xf32>
    %99 = arith.mulf %50, %98 : vector<1x128xf32>
    %100 = arith.addf %96, %99 : vector<1x128xf32>
    %c1_52 = arith.constant 1 : index
    %c3_53 = arith.constant 3 : index
    %101 = memref.load %arg4[%c1_52, %c3_53] : memref<12x4xf32, #tpu.memory_space<smem>>
    %102 = vector.broadcast %101 : f32 to vector<1x128xf32>
    %103 = arith.mulf %65, %102 : vector<1x128xf32>
    %104 = arith.addf %100, %103 : vector<1x128xf32>
    %c1_54 = arith.constant 1 : index
    %c0_55 = arith.constant 0 : index
    %c0_56 = arith.constant 0 : index
    %105 = vector.load %arg6[%c1_54, %c0_55, %c0_56] : memref<12x1x128xf32, #tpu.memory_space<vmem>>, vector<1x1x128xf32>
    %106 = vector.shape_cast %105 : vector<1x1x128xf32> to vector<1x128xf32>
    %107 = vector.shape_cast %104 : vector<1x128xf32> to vector<1x1x128xf32>
    tpu.vector_store %arg6[%c1_54, %c0_55, %c0_56], %107 {strides = array<i32>} : memref<12x1x128xf32, #tpu.memory_space<vmem>>, vector<1x1x128xf32>,
    %c2_57 = arith.constant 2 : index
    %c0_58 = arith.constant 0 : index
    %108 = memref.load %arg4[%c2_57, %c0_58] : memref<12x4xf32, #tpu.memory_space<smem>>
    %109 = vector.broadcast %108 : f32 to vector<1x128xf32>
    %110 = arith.mulf %20, %109 : vector<1x128xf32>
    %c2_59 = arith.constant 2 : index
    %111 = memref.load %arg5[%c2_59] : memref<12xf32, #tpu.memory_space<smem>>
    %112 = vector.broadcast %111 : f32 to vector<1x128xf32>
    %113 = arith.addf %110, %112 : vector<1x128xf32>
    %c2_60 = arith.constant 2 : index
    %c1_61 = arith.constant 1 : index
    %114 = memref.load %arg4[%c2_60, %c1_61] : memref<12x4xf32, #tpu.memory_space<smem>>
    %115 = vector.broadcast %114 : f32 to vector<1x128xf32>
    %116 = arith.mulf %35, %115 : vector<1x128xf32>
    %117 = arith.addf %113, %116 : vector<1x128xf32>
    %c2_62 = arith.constant 2 : index
    %c2_63 = arith.constant 2 : index
    %118 = memref.load %arg4[%c2_62, %c2_63] : memref<12x4xf32, #tpu.memory_space<smem>>
    %119 = vector.broadcast %118 : f32 to vector<1x128xf32>
    %120 = arith.mulf %50, %119 : vector<1x128xf32>
    %121 = arith.addf %117, %120 : vector<1x128xf32>
    %c2_64 = arith.constant 2 : index
    %c3_65 = arith.constant 3 : index
    %122 = memref.load %arg4[%c2_64, %c3_65] : memref<12x4xf32, #tpu.memory_space<smem>>
    %123 = vector.broadcast %122 : f32 to vector<1x128xf32>
    %124 = arith.mulf %65, %123 : vector<1x128xf32>
    %125 = arith.addf %121, %124 : vector<1x128xf32>
    %c2_66 = arith.constant 2 : index
    %c0_67 = arith.constant 0 : index
    %c0_68 = arith.constant 0 : index
    %126 = vector.load %arg6[%c2_66, %c0_67, %c0_68] : memref<12x1x128xf32, #tpu.memory_space<vmem>>, vector<1x1x128xf32>
    %127 = vector.shape_cast %126 : vector<1x1x128xf32> to vector<1x128xf32>
    %128 = vector.shape_cast %125 : vector<1x128xf32> to vector<1x1x128xf32>
    tpu.vector_store %arg6[%c2_66, %c0_67, %c0_68], %128 {strides = array<i32>} : memref<12x1x128xf32, #tpu.memory_space<vmem>>, vector<1x1x128xf32>,
    %c3_69 = arith.constant 3 : index
    %c0_70 = arith.constant 0 : index
    %129 = memref.load %arg4[%c3_69, %c0_70] : memref<12x4xf32, #tpu.memory_space<smem>>
    %130 = vector.broadcast %129 : f32 to vector<1x128xf32>
    %131 = arith.mulf %20, %130 : vector<1x128xf32>
    %c3_71 = arith.constant 3 : index
    %132 = memref.load %arg5[%c3_71] : memref<12xf32, #tpu.memory_space<smem>>
    %133 = vector.broadcast %132 : f32 to vector<1x128xf32>
    %134 = arith.addf %131, %133 : vector<1x128xf32>
    %c3_72 = arith.constant 3 : index
    %c1_73 = arith.constant 1 : index
    %135 = memref.load %arg4[%c3_72, %c1_73] : memref<12x4xf32, #tpu.memory_space<smem>>
    %136 = vector.broadcast %135 : f32 to vector<1x128xf32>
    %137 = arith.mulf %35, %136 : vector<1x128xf32>
    %138 = arith.addf %134, %137 : vector<1x128xf32>
    %c3_74 = arith.constant 3 : index
    %c2_75 = arith.constant 2 : index
    %139 = memref.load %arg4[%c3_74, %c2_75] : memref<12x4xf32, #tpu.memory_space<smem>>
    %140 = vector.broadcast %139 : f32 to vector<1x128xf32>
    %141 = arith.mulf %50, %140 : vector<1x128xf32>
    %142 = arith.addf %138, %141 : vector<1x128xf32>
    %c3_76 = arith.constant 3 : index
    %c3_77 = arith.constant 3 : index
    %143 = memref.load %arg4[%c3_76, %c3_77] : memref<12x4xf32, #tpu.memory_space<smem>>
    %144 = vector.broadcast %143 : f32 to vector<1x128xf32>
    %145 = arith.mulf %65, %144 : vector<1x128xf32>
    %146 = arith.addf %142, %145 : vector<1x128xf32>
    %c3_78 = arith.constant 3 : index
    %c0_79 = arith.constant 0 : index
    %c0_80 = arith.constant 0 : index
    %147 = vector.load %arg6[%c3_78, %c0_79, %c0_80] : memref<12x1x128xf32, #tpu.memory_space<vmem>>, vector<1x1x128xf32>
    %148 = vector.shape_cast %147 : vector<1x1x128xf32> to vector<1x128xf32>
    %149 = vector.shape_cast %146 : vector<1x128xf32> to vector<1x1x128xf32>
    tpu.vector_store %arg6[%c3_78, %c0_79, %c0_80], %149 {strides = array<i32>} : memref<12x1x128xf32, #tpu.memory_space<vmem>>, vector<1x1x128xf32>,
    %c4 = arith.constant 4 : index
    %c0_81 = arith.constant 0 : index
    %150 = memref.load %arg4[%c4, %c0_81] : memref<12x4xf32, #tpu.memory_space<smem>>
    %151 = vector.broadcast %150 : f32 to vector<1x128xf32>
    %152 = arith.mulf %20, %151 : vector<1x128xf32>
    %c4_82 = arith.constant 4 : index
    %153 = memref.load %arg5[%c4_82] : memref<12xf32, #tpu.memory_space<smem>>
    %154 = vector.broadcast %153 : f32 to vector<1x128xf32>
    %155 = arith.addf %152, %154 : vector<1x128xf32>
    %c4_83 = arith.constant 4 : index
    %c1_84 = arith.constant 1 : index
    %156 = memref.load %arg4[%c4_83, %c1_84] : memref<12x4xf32, #tpu.memory_space<smem>>
    %157 = vector.broadcast %156 : f32 to vector<1x128xf32>
    %158 = arith.mulf %35, %157 : vector<1x128xf32>
    %159 = arith.addf %155, %158 : vector<1x128xf32>
    %c4_85 = arith.constant 4 : index
    %c2_86 = arith.constant 2 : index
    %160 = memref.load %arg4[%c4_85, %c2_86] : memref<12x4xf32, #tpu.memory_space<smem>>
    %161 = vector.broadcast %160 : f32 to vector<1x128xf32>
    %162 = arith.mulf %50, %161 : vector<1x128xf32>
    %163 = arith.addf %159, %162 : vector<1x128xf32>
    %c4_87 = arith.constant 4 : index
    %c3_88 = arith.constant 3 : index
    %164 = memref.load %arg4[%c4_87, %c3_88] : memref<12x4xf32, #tpu.memory_space<smem>>
    %165 = vector.broadcast %164 : f32 to vector<1x128xf32>
    %166 = arith.mulf %65, %165 : vector<1x128xf32>
    %167 = arith.addf %163, %166 : vector<1x128xf32>
    %c4_89 = arith.constant 4 : index
    %c0_90 = arith.constant 0 : index
    %c0_91 = arith.constant 0 : index
    %168 = vector.load %arg6[%c4_89, %c0_90, %c0_91] : memref<12x1x128xf32, #tpu.memory_space<vmem>>, vector<1x1x128xf32>
    %169 = vector.shape_cast %168 : vector<1x1x128xf32> to vector<1x128xf32>
    %170 = vector.shape_cast %167 : vector<1x128xf32> to vector<1x1x128xf32>
    tpu.vector_store %arg6[%c4_89, %c0_90, %c0_91], %170 {strides = array<i32>} : memref<12x1x128xf32, #tpu.memory_space<vmem>>, vector<1x1x128xf32>,
    %c5 = arith.constant 5 : index
    %c0_92 = arith.constant 0 : index
    %171 = memref.load %arg4[%c5, %c0_92] : memref<12x4xf32, #tpu.memory_space<smem>>
    %172 = vector.broadcast %171 : f32 to vector<1x128xf32>
    %173 = arith.mulf %20, %172 : vector<1x128xf32>
    %c5_93 = arith.constant 5 : index
    %174 = memref.load %arg5[%c5_93] : memref<12xf32, #tpu.memory_space<smem>>
    %175 = vector.broadcast %174 : f32 to vector<1x128xf32>
    %176 = arith.addf %173, %175 : vector<1x128xf32>
    %c5_94 = arith.constant 5 : index
    %c1_95 = arith.constant 1 : index
    %177 = memref.load %arg4[%c5_94, %c1_95] : memref<12x4xf32, #tpu.memory_space<smem>>
    %178 = vector.broadcast %177 : f32 to vector<1x128xf32>
    %179 = arith.mulf %35, %178 : vector<1x128xf32>
    %180 = arith.addf %176, %179 : vector<1x128xf32>
    %c5_96 = arith.constant 5 : index
    %c2_97 = arith.constant 2 : index
    %181 = memref.load %arg4[%c5_96, %c2_97] : memref<12x4xf32, #tpu.memory_space<smem>>
    %182 = vector.broadcast %181 : f32 to vector<1x128xf32>
    %183 = arith.mulf %50, %182 : vector<1x128xf32>
    %184 = arith.addf %180, %183 : vector<1x128xf32>
    %c5_98 = arith.constant 5 : index
    %c3_99 = arith.constant 3 : index
    %185 = memref.load %arg4[%c5_98, %c3_99] : memref<12x4xf32, #tpu.memory_space<smem>>
    %186 = vector.broadcast %185 : f32 to vector<1x128xf32>
    %187 = arith.mulf %65, %186 : vector<1x128xf32>
    %188 = arith.addf %184, %187 : vector<1x128xf32>
    %c5_100 = arith.constant 5 : index
    %c0_101 = arith.constant 0 : index
    %c0_102 = arith.constant 0 : index
    %189 = vector.load %arg6[%c5_100, %c0_101, %c0_102] : memref<12x1x128xf32, #tpu.memory_space<vmem>>, vector<1x1x128xf32>
    %190 = vector.shape_cast %189 : vector<1x1x128xf32> to vector<1x128xf32>
    %191 = vector.shape_cast %188 : vector<1x128xf32> to vector<1x1x128xf32>
    tpu.vector_store %arg6[%c5_100, %c0_101, %c0_102], %191 {strides = array<i32>} : memref<12x1x128xf32, #tpu.memory_space<vmem>>, vector<1x1x128xf32>,
    %c6 = arith.constant 6 : index
    %c0_103 = arith.constant 0 : index
    %192 = memref.load %arg4[%c6, %c0_103] : memref<12x4xf32, #tpu.memory_space<smem>>
    %193 = vector.broadcast %192 : f32 to vector<1x128xf32>
    %194 = arith.mulf %20, %193 : vector<1x128xf32>
    %c6_104 = arith.constant 6 : index
    %195 = memref.load %arg5[%c6_104] : memref<12xf32, #tpu.memory_space<smem>>
    %196 = vector.broadcast %195 : f32 to vector<1x128xf32>
    %197 = arith.addf %194, %196 : vector<1x128xf32>
    %c6_105 = arith.constant 6 : index
    %c1_106 = arith.constant 1 : index
    %198 = memref.load %arg4[%c6_105, %c1_106] : memref<12x4xf32, #tpu.memory_space<smem>>
    %199 = vector.broadcast %198 : f32 to vector<1x128xf32>
    %200 = arith.mulf %35, %199 : vector<1x128xf32>
    %201 = arith.addf %197, %200 : vector<1x128xf32>
    %c6_107 = arith.constant 6 : index
    %c2_108 = arith.constant 2 : index
    %202 = memref.load %arg4[%c6_107, %c2_108] : memref<12x4xf32, #tpu.memory_space<smem>>
    %203 = vector.broadcast %202 : f32 to vector<1x128xf32>
    %204 = arith.mulf %50, %203 : vector<1x128xf32>
    %205 = arith.addf %201, %204 : vector<1x128xf32>
    %c6_109 = arith.constant 6 : index
    %c3_110 = arith.constant 3 : index
    %206 = memref.load %arg4[%c6_109, %c3_110] : memref<12x4xf32, #tpu.memory_space<smem>>
    %207 = vector.broadcast %206 : f32 to vector<1x128xf32>
    %208 = arith.mulf %65, %207 : vector<1x128xf32>
    %209 = arith.addf %205, %208 : vector<1x128xf32>
    %c6_111 = arith.constant 6 : index
    %c0_112 = arith.constant 0 : index
    %c0_113 = arith.constant 0 : index
    %210 = vector.load %arg6[%c6_111, %c0_112, %c0_113] : memref<12x1x128xf32, #tpu.memory_space<vmem>>, vector<1x1x128xf32>
    %211 = vector.shape_cast %210 : vector<1x1x128xf32> to vector<1x128xf32>
    %212 = vector.shape_cast %209 : vector<1x128xf32> to vector<1x1x128xf32>
    tpu.vector_store %arg6[%c6_111, %c0_112, %c0_113], %212 {strides = array<i32>} : memref<12x1x128xf32, #tpu.memory_space<vmem>>, vector<1x1x128xf32>,
    %c7 = arith.constant 7 : index
    %c0_114 = arith.constant 0 : index
    %213 = memref.load %arg4[%c7, %c0_114] : memref<12x4xf32, #tpu.memory_space<smem>>
    %214 = vector.broadcast %213 : f32 to vector<1x128xf32>
    %215 = arith.mulf %20, %214 : vector<1x128xf32>
    %c7_115 = arith.constant 7 : index
    %216 = memref.load %arg5[%c7_115] : memref<12xf32, #tpu.memory_space<smem>>
    %217 = vector.broadcast %216 : f32 to vector<1x128xf32>
    %218 = arith.addf %215, %217 : vector<1x128xf32>
    %c7_116 = arith.constant 7 : index
    %c1_117 = arith.constant 1 : index
    %219 = memref.load %arg4[%c7_116, %c1_117] : memref<12x4xf32, #tpu.memory_space<smem>>
    %220 = vector.broadcast %219 : f32 to vector<1x128xf32>
    %221 = arith.mulf %35, %220 : vector<1x128xf32>
    %222 = arith.addf %218, %221 : vector<1x128xf32>
    %c7_118 = arith.constant 7 : index
    %c2_119 = arith.constant 2 : index
    %223 = memref.load %arg4[%c7_118, %c2_119] : memref<12x4xf32, #tpu.memory_space<smem>>
    %224 = vector.broadcast %223 : f32 to vector<1x128xf32>
    %225 = arith.mulf %50, %224 : vector<1x128xf32>
    %226 = arith.addf %222, %225 : vector<1x128xf32>
    %c7_120 = arith.constant 7 : index
    %c3_121 = arith.constant 3 : index
    %227 = memref.load %arg4[%c7_120, %c3_121] : memref<12x4xf32, #tpu.memory_space<smem>>
    %228 = vector.broadcast %227 : f32 to vector<1x128xf32>
    %229 = arith.mulf %65, %228 : vector<1x128xf32>
    %230 = arith.addf %226, %229 : vector<1x128xf32>
    %c7_122 = arith.constant 7 : index
    %c0_123 = arith.constant 0 : index
    %c0_124 = arith.constant 0 : index
    %231 = vector.load %arg6[%c7_122, %c0_123, %c0_124] : memref<12x1x128xf32, #tpu.memory_space<vmem>>, vector<1x1x128xf32>
    %232 = vector.shape_cast %231 : vector<1x1x128xf32> to vector<1x128xf32>
    %233 = vector.shape_cast %230 : vector<1x128xf32> to vector<1x1x128xf32>
    tpu.vector_store %arg6[%c7_122, %c0_123, %c0_124], %233 {strides = array<i32>} : memref<12x1x128xf32, #tpu.memory_space<vmem>>, vector<1x1x128xf32>,
    %c8 = arith.constant 8 : index
    %c0_125 = arith.constant 0 : index
    %234 = memref.load %arg4[%c8, %c0_125] : memref<12x4xf32, #tpu.memory_space<smem>>
    %235 = vector.broadcast %234 : f32 to vector<1x128xf32>
    %236 = arith.mulf %20, %235 : vector<1x128xf32>
    %c8_126 = arith.constant 8 : index
    %237 = memref.load %arg5[%c8_126] : memref<12xf32, #tpu.memory_space<smem>>
    %238 = vector.broadcast %237 : f32 to vector<1x128xf32>
    %239 = arith.addf %236, %238 : vector<1x128xf32>
    %c8_127 = arith.constant 8 : index
    %c1_128 = arith.constant 1 : index
    %240 = memref.load %arg4[%c8_127, %c1_128] : memref<12x4xf32, #tpu.memory_space<smem>>
    %241 = vector.broadcast %240 : f32 to vector<1x128xf32>
    %242 = arith.mulf %35, %241 : vector<1x128xf32>
    %243 = arith.addf %239, %242 : vector<1x128xf32>
    %c8_129 = arith.constant 8 : index
    %c2_130 = arith.constant 2 : index
    %244 = memref.load %arg4[%c8_129, %c2_130] : memref<12x4xf32, #tpu.memory_space<smem>>
    %245 = vector.broadcast %244 : f32 to vector<1x128xf32>
    %246 = arith.mulf %50, %245 : vector<1x128xf32>
    %247 = arith.addf %243, %246 : vector<1x128xf32>
    %c8_131 = arith.constant 8 : index
    %c3_132 = arith.constant 3 : index
    %248 = memref.load %arg4[%c8_131, %c3_132] : memref<12x4xf32, #tpu.memory_space<smem>>
    %249 = vector.broadcast %248 : f32 to vector<1x128xf32>
    %250 = arith.mulf %65, %249 : vector<1x128xf32>
    %251 = arith.addf %247, %250 : vector<1x128xf32>
    %c8_133 = arith.constant 8 : index
    %c0_134 = arith.constant 0 : index
    %c0_135 = arith.constant 0 : index
    %252 = vector.load %arg6[%c8_133, %c0_134, %c0_135] : memref<12x1x128xf32, #tpu.memory_space<vmem>>, vector<1x1x128xf32>
    %253 = vector.shape_cast %252 : vector<1x1x128xf32> to vector<1x128xf32>
    %254 = vector.shape_cast %251 : vector<1x128xf32> to vector<1x1x128xf32>
    tpu.vector_store %arg6[%c8_133, %c0_134, %c0_135], %254 {strides = array<i32>} : memref<12x1x128xf32, #tpu.memory_space<vmem>>, vector<1x1x128xf32>,
    %c9 = arith.constant 9 : index
    %c0_136 = arith.constant 0 : index
    %255 = memref.load %arg4[%c9, %c0_136] : memref<12x4xf32, #tpu.memory_space<smem>>
    %256 = vector.broadcast %255 : f32 to vector<1x128xf32>
    %257 = arith.mulf %20, %256 : vector<1x128xf32>
    %c9_137 = arith.constant 9 : index
    %258 = memref.load %arg5[%c9_137] : memref<12xf32, #tpu.memory_space<smem>>
    %259 = vector.broadcast %258 : f32 to vector<1x128xf32>
    %260 = arith.addf %257, %259 : vector<1x128xf32>
    %c9_138 = arith.constant 9 : index
    %c1_139 = arith.constant 1 : index
    %261 = memref.load %arg4[%c9_138, %c1_139] : memref<12x4xf32, #tpu.memory_space<smem>>
    %262 = vector.broadcast %261 : f32 to vector<1x128xf32>
    %263 = arith.mulf %35, %262 : vector<1x128xf32>
    %264 = arith.addf %260, %263 : vector<1x128xf32>
    %c9_140 = arith.constant 9 : index
    %c2_141 = arith.constant 2 : index
    %265 = memref.load %arg4[%c9_140, %c2_141] : memref<12x4xf32, #tpu.memory_space<smem>>
    %266 = vector.broadcast %265 : f32 to vector<1x128xf32>
    %267 = arith.mulf %50, %266 : vector<1x128xf32>
    %268 = arith.addf %264, %267 : vector<1x128xf32>
    %c9_142 = arith.constant 9 : index
    %c3_143 = arith.constant 3 : index
    %269 = memref.load %arg4[%c9_142, %c3_143] : memref<12x4xf32, #tpu.memory_space<smem>>
    %270 = vector.broadcast %269 : f32 to vector<1x128xf32>
    %271 = arith.mulf %65, %270 : vector<1x128xf32>
    %272 = arith.addf %268, %271 : vector<1x128xf32>
    %c9_144 = arith.constant 9 : index
    %c0_145 = arith.constant 0 : index
    %c0_146 = arith.constant 0 : index
    %273 = vector.load %arg6[%c9_144, %c0_145, %c0_146] : memref<12x1x128xf32, #tpu.memory_space<vmem>>, vector<1x1x128xf32>
    %274 = vector.shape_cast %273 : vector<1x1x128xf32> to vector<1x128xf32>
    %275 = vector.shape_cast %272 : vector<1x128xf32> to vector<1x1x128xf32>
    tpu.vector_store %arg6[%c9_144, %c0_145, %c0_146], %275 {strides = array<i32>} : memref<12x1x128xf32, #tpu.memory_space<vmem>>, vector<1x1x128xf32>,
    %c10 = arith.constant 10 : index
    %c0_147 = arith.constant 0 : index
    %276 = memref.load %arg4[%c10, %c0_147] : memref<12x4xf32, #tpu.memory_space<smem>>
    %277 = vector.broadcast %276 : f32 to vector<1x128xf32>
    %278 = arith.mulf %20, %277 : vector<1x128xf32>
    %c10_148 = arith.constant 10 : index
    %279 = memref.load %arg5[%c10_148] : memref<12xf32, #tpu.memory_space<smem>>
    %280 = vector.broadcast %279 : f32 to vector<1x128xf32>
    %281 = arith.addf %278, %280 : vector<1x128xf32>
    %c10_149 = arith.constant 10 : index
    %c1_150 = arith.constant 1 : index
    %282 = memref.load %arg4[%c10_149, %c1_150] : memref<12x4xf32, #tpu.memory_space<smem>>
    %283 = vector.broadcast %282 : f32 to vector<1x128xf32>
    %284 = arith.mulf %35, %283 : vector<1x128xf32>
    %285 = arith.addf %281, %284 : vector<1x128xf32>
    %c10_151 = arith.constant 10 : index
    %c2_152 = arith.constant 2 : index
    %286 = memref.load %arg4[%c10_151, %c2_152] : memref<12x4xf32, #tpu.memory_space<smem>>
    %287 = vector.broadcast %286 : f32 to vector<1x128xf32>
    %288 = arith.mulf %50, %287 : vector<1x128xf32>
    %289 = arith.addf %285, %288 : vector<1x128xf32>
    %c10_153 = arith.constant 10 : index
    %c3_154 = arith.constant 3 : index
    %290 = memref.load %arg4[%c10_153, %c3_154] : memref<12x4xf32, #tpu.memory_space<smem>>
    %291 = vector.broadcast %290 : f32 to vector<1x128xf32>
    %292 = arith.mulf %65, %291 : vector<1x128xf32>
    %293 = arith.addf %289, %292 : vector<1x128xf32>
    %c10_155 = arith.constant 10 : index
    %c0_156 = arith.constant 0 : index
    %c0_157 = arith.constant 0 : index
    %294 = vector.load %arg6[%c10_155, %c0_156, %c0_157] : memref<12x1x128xf32, #tpu.memory_space<vmem>>, vector<1x1x128xf32>
    %295 = vector.shape_cast %294 : vector<1x1x128xf32> to vector<1x128xf32>
    %296 = vector.shape_cast %293 : vector<1x128xf32> to vector<1x1x128xf32>
    tpu.vector_store %arg6[%c10_155, %c0_156, %c0_157], %296 {strides = array<i32>} : memref<12x1x128xf32, #tpu.memory_space<vmem>>, vector<1x1x128xf32>,
    %c11 = arith.constant 11 : index
    %c0_158 = arith.constant 0 : index
    %297 = memref.load %arg4[%c11, %c0_158] : memref<12x4xf32, #tpu.memory_space<smem>>
    %298 = vector.broadcast %297 : f32 to vector<1x128xf32>
    %299 = arith.mulf %20, %298 : vector<1x128xf32>
    %c11_159 = arith.constant 11 : index
    %300 = memref.load %arg5[%c11_159] : memref<12xf32, #tpu.memory_space<smem>>
    %301 = vector.broadcast %300 : f32 to vector<1x128xf32>
    %302 = arith.addf %299, %301 : vector<1x128xf32>
    %c11_160 = arith.constant 11 : index
    %c1_161 = arith.constant 1 : index
    %303 = memref.load %arg4[%c11_160, %c1_161] : memref<12x4xf32, #tpu.memory_space<smem>>
    %304 = vector.broadcast %303 : f32 to vector<1x128xf32>
    %305 = arith.mulf %35, %304 : vector<1x128xf32>
    %306 = arith.addf %302, %305 : vector<1x128xf32>
    %c11_162 = arith.constant 11 : index
    %c2_163 = arith.constant 2 : index
    %307 = memref.load %arg4[%c11_162, %c2_163] : memref<12x4xf32, #tpu.memory_space<smem>>
    %308 = vector.broadcast %307 : f32 to vector<1x128xf32>
    %309 = arith.mulf %50, %308 : vector<1x128xf32>
    %310 = arith.addf %306, %309 : vector<1x128xf32>
    %c11_164 = arith.constant 11 : index
    %c3_165 = arith.constant 3 : index
    %311 = memref.load %arg4[%c11_164, %c3_165] : memref<12x4xf32, #tpu.memory_space<smem>>
    %312 = vector.broadcast %311 : f32 to vector<1x128xf32>
    %313 = arith.mulf %65, %312 : vector<1x128xf32>
    %314 = arith.addf %310, %313 : vector<1x128xf32>
    %c11_166 = arith.constant 11 : index
    %c0_167 = arith.constant 0 : index
    %c0_168 = arith.constant 0 : index
    %315 = vector.load %arg6[%c11_166, %c0_167, %c0_168] : memref<12x1x128xf32, #tpu.memory_space<vmem>>, vector<1x1x128xf32>
    %316 = vector.shape_cast %315 : vector<1x1x128xf32> to vector<1x128xf32>
    %317 = vector.shape_cast %314 : vector<1x128xf32> to vector<1x1x128xf32>
    tpu.vector_store %arg6[%c11_166, %c0_167, %c0_168], %317 {strides = array<i32>} : memref<12x1x128xf32, #tpu.memory_space<vmem>>, vector<1x1x128xf32>,
    return
  }
  func.func @transform_0(%arg0: i32) -> (i32, i32, i32) {
    %c0_i32 = arith.constant 0 : i32
    %c0_i32_0 = arith.constant 0 : i32
    %c0_i32_1 = arith.constant 0 : i32
    return %c0_i32, %arg0, %c0_i32_0 : i32, i32, i32
  }
  func.func @transform_1(%arg0: i32) -> (i32, i32) {
    %c0_i32 = arith.constant 0 : i32
    %c0_i32_0 = arith.constant 0 : i32
    %c0_i32_1 = arith.constant 0 : i32
    return %c0_i32, %c0_i32_0 : i32, i32
  }
  func.func @transform_2(%arg0: i32) -> i32 {
    %c0_i32 = arith.constant 0 : i32
    %c0_i32_0 = arith.constant 0 : i32
    return %c0_i32 : i32
  }
  func.func @transform_3(%arg0: i32) -> (i32, i32) {
    %c0_i32 = arith.constant 0 : i32
    %c0_i32_0 = arith.constant 0 : i32
    %c0_i32_1 = arith.constant 0 : i32
    return %c0_i32, %c0_i32_0 : i32, i32
  }
  func.func @transform_4(%arg0: i32) -> i32 {
    %c0_i32 = arith.constant 0 : i32
    %c0_i32_0 = arith.constant 0 : i32
    return %c0_i32 : i32
  }
  func.func @transform_5(%arg0: i32) -> (i32, i32, i32) {
    %c0_i32 = arith.constant 0 : i32
    %c0_i32_0 = arith.constant 0 : i32
    %c0_i32_1 = arith.constant 0 : i32
    return %c0_i32, %arg0, %c0_i32_0 : i32, i32, i32
  }
}

</mosaic_0001>

<bundles_post_ra>
// kernel: decoder_forward.1
= control target key start
LH: loop header
LB: loop body
LE: loop exit
PB: predicated region body
PF: predicated region fallthrough
CT: control target
= control target key end

     0   :  { %10 = vsyncpa [#allocation3], 0  ;;  %s894_s0 = inlined_call_operand.vmem [shape: f32[3,1,128], index: 0, kind: input, shape index: {}]   ;;  %s895_s1 = inlined_call_operand.vmem [shape: f32[4,3], index: 1, kind: input, shape index: {}]   ;;  %s896_s2 = inlined_call_operand.vmem [shape: f32[4], index: 2, kind: input, shape index: {}]   ;;  %s897_s3 = inlined_call_operand.vmem [shape: f32[12,4], index: 3, kind: input, shape index: {}]   ;;  %s898_s4 = inlined_call_operand.vmem [shape: f32[12], index: 4, kind: input, shape index: {}]   ;;  %s899_s5 = inlined_call_operand.vmem [shape: f32[12,1,128], index: 5, kind: output, shape index: {}]  }
   0x1   :  { %11 = vsyncpa [#allocation5], 0  ;;  %s31_s20 = sshll.u32 %s896_s2, 4  ;;  %s32_s20 = int_to_ptr.vmem [resolvable:$true] %s31_s20 }
   0x2   :  { %12 = vsyncpa [#allocation8], 0  ;;  %s21_s23 = sshll.u32 %s895_s1, 4  ;;  %s480_s24 = scalar_lea.vmem %s32_s20, 16  ;;  %s22_s23 = int_to_ptr.vmem [resolvable:$true] %s21_s23 }
   0x3   :  { %p481_p0 = scmp.ne.s32.totalorder %s32_s20, %s480_s24  ;;  %p485_p1 = scmp.lt.s32.totalorder %s32_s20, %s32_s20 }
   0x4   :  { %p486_p2 = scmp.lt.s32.totalorder %s480_s24, %s480_s24 }
   0x6   :  { %p487_p3 = por %p486_p2, %p485_p1 }
   0x8   :  { %p488_p4 = pnand %p487_p3, %p481_p0 }
   0xa   :  { %491 = shalt.err (!%p488_p4)
}
   0xb   :  { %s534_s25 = smov [#allocation4]   ;;  %s492_s26 = scalar_lea.vmem %s22_s23, 64 }
   0xc   :  { %34 = dma.vmem_to_smem %s32_s20, 16, %s534_s25, [#allocation5]  }
   0xd   :  { %p493_p5 = scmp.ne.s32.totalorder %s22_s23, %s492_s26  ;;  %p497_p6 = scmp.lt.s32.totalorder %s22_s23, %s22_s23 }
   0xe   :  { %p498_p7 = scmp.lt.s32.totalorder %s492_s26, %s492_s26 }
  0x10   :  { %p499_p8 = por %p498_p7, %p497_p6 }
  0x12   :  { %p500_p9 = pnand %p499_p8, %p493_p5 }
  0x14   :  { %503 = shalt.err (!%p500_p9)
}
  0x15   :  { %s535_s2 = smov [#allocation2]   ;;  %s40_s28 = sshll.u32 %s897_s3, 4  ;;  %s41_s28 = int_to_ptr.vmem [resolvable:$true] %s40_s28 }
  0x16   :  { %24 = dma.vmem_to_smem %s22_s23, 64, %s535_s2, [#allocation3]  }
  0x17   :  { %s53_s6 = sshll.u32 %s898_s4, 4  ;;  %s504_s7 = scalar_lea.vmem %s41_s28, 256  ;;  %s54_s6 = int_to_ptr.vmem [resolvable:$true] %s53_s6 }
  0x18   :  { %p505_p10 = scmp.ne.s32.totalorder %s41_s28, %s504_s7  ;;  %p509_p11 = scmp.lt.s32.totalorder %s41_s28, %s41_s28 }
  0x19   :  { %p510_p12 = scmp.lt.s32.totalorder %s504_s7, %s504_s7 }
  0x1b   :  { %p511_p13 = por %p510_p12, %p509_p11 }
  0x1d   :  { %p512_p0 = pnand %p511_p13, %p505_p10 }
  0x1f   :  { %515 = shalt.err (!%p512_p0)
}
  0x20   :  { %s536_s8 = smov [#allocation6]   ;;  %s537_s9 = smov 128  }
  0x21   :  { %s538_s10 = smov 8   ;;  %s516_s11 = scalar_lea.vmem %s54_s6, 16 }
  0x22   :  { %46 = dma.vmem_to_smem %s41_s28, 256, %s536_s8, [#allocation5], %s537_s9, %s537_s9, %s538_s10  }
  0x23   :  { %p517_p1 = scmp.ne.s32.totalorder %s54_s6, %s516_s11  ;;  %p521_p2 = scmp.lt.s32.totalorder %s54_s6, %s54_s6 }
  0x24   :  { %p522_p3 = scmp.lt.s32.totalorder %s516_s11, %s516_s11 }
  0x26   :  { %p523_p4 = por %p522_p3, %p521_p2 }
  0x28   :  { %p524_p5 = pnand %p523_p4, %p517_p1 }
  0x2a   :  { %527 = shalt.err (!%p524_p5)
}
  0x2b   :  { %s539_s3 = smov [#allocation7]  }
  0x2c   :  { %56 = dma.vmem_to_smem %s54_s6, 16, %s539_s3, [#allocation8]  }
  0x2d   :  { %528 = dma.done.wait [#allocation3], 64  }
  0x2e   :  { %529 = vsyncadd [#allocation3], 4294967232 }
  0x2f   :  { %530 = dma.done.wait [#allocation5], 272  }
  0x30   :  { %531 = vsyncadd [#allocation5], 4294967024 }
  0x31   :  { %532 = dma.done.wait [#allocation8], 16  }
  0x32   :  { %533 = vsyncadd [#allocation8], 4294967280 }
  0x33   :  { %69 = sfence }
  0x34   :  { %s75_s4 = sld [smem:[#allocation2]]  ;;  %s383_s13 = sld [smem:[#allocation2 + $0x1]]  ;;  %v70_v0 = vld [vmem:[%s894_s0] sm:$0x1]  ;;  %v381_v1 = vld [vmem:[%s894_s0 + $0x1] sm:$0x1] }
  0x35   :  { %s78_s12 = sld [smem:[#allocation4]]  ;;  %s384_s14 = sld [smem:[#allocation2 + $0x2]]  ;;  %v382_v2 = vld [vmem:[%s894_s0 + $0x2] sm:$0x1] }
  0x36   :  { %s385_s15 = sld [smem:[#allocation2 + $0x80]]  ;;  %s582_s16 = sld [smem:[#allocation4 + $0x1]] }
  0x37   :  { %s387_s19 = sld [smem:[#allocation2 + $0x81]]  ;;  %s388_s20 = sld [smem:[#allocation2 + $0x82]] }
  0x38   :  { %s590_s23 = sld [smem:[#allocation2 + $0x100]]  ;;  %s592_s24 = sld [smem:[#allocation4 + $0x2]] }
  0x39   :  { %s597_s2 = sld [smem:[#allocation2 + $0x101]]  ;;  %s599_s1 = sld [smem:[#allocation2 + $0x102]] }
  0x3a   :  { %v76_v3 = vstv %s75_s4  ;;  %s601_s27 = sld [smem:[#allocation2 + $0x180]]  ;;  %s603_s28 = sld [smem:[#allocation4 + $0x3]]  ;;  %v82_v6 = vstv %s383_s13 }
  0x3b   :  { %v79_v4 = vstv %s78_s12  ;;  %v77_v5 = vmul.f32 %v76_v3, %v70_v0  ;;  %v86_v7 = vstv %s384_s14  ;;  %s605_s29 = sld [smem:[#allocation2 + $0x181]]  ;;  %s607_s30 = sld [smem:[#allocation2 + $0x182]]  ;;  %v83_v8 = vmul.f32 %v381_v1, %v82_v6 }
  0x3c   :  { %v87_v9 = vmul.f32 %v382_v2, %v86_v7  ;;  %v91_v10 = vstv %s385_s15  ;;  %v94_v11 = vstv %s582_s16  ;;  %s610_s0 = sld [smem:[#allocation6]]  ;;  %s614_s7 = sld [smem:[#allocation6 + $0x1]] }
  0x3d   :  { %s612_s6 = sld [smem:[#allocation7]]  ;;  %v80_v12 = vadd.f32 %v79_v4, %v77_v5  ;;  %v92_v13 = vmul.f32 %v91_v10, %v70_v0  ;;  %v97_v14 = vstv %s387_s19  ;;  %v101_v15 = vstv %s388_s20  ;;  %s616_s8 = sld [smem:[#allocation6 + $0x2]] }
  0x3e   :  { %v98_v16 = vmul.f32 %v381_v1, %v97_v14  ;;  %v102_v17 = vmul.f32 %v382_v2, %v101_v15  ;;  %v106_v18 = vstv %s590_s23  ;;  %v109_v19 = vstv %s592_s24  ;;  %s620_s9 = sld [smem:[#allocation6 + $0x3]]  ;;  %s622_s10 = sld [smem:[#allocation6 + $0x80]] }
  0x3f   :  { %v84_v20 = vadd.f32 %v83_v8, %v80_v12  ;;  %v95_v21 = vadd.f32 %v94_v11, %v92_v13  ;;  %v107_v22 = vmul.f32 %v106_v18, %v70_v0  ;;  %v112_v23 = vstv %s597_s2  ;;  %s625_s11 = sld [smem:[#allocation7 + $0x1]]  ;;  %s632_s4 = sld [smem:[#allocation6 + $0x82]] }
  0x40   :  { %s627_s3 = sld [smem:[#allocation6 + $0x81]]  ;;  %v113_v24 = vmul.f32 %v381_v1, %v112_v23  ;;  %v116_v25 = vstv %s599_s1  ;;  %v121_v26 = vstv %s601_s27  ;;  %v124_v27 = vstv %s603_s28  ;;  %s634_s12 = sld [smem:[#allocation6 + $0x83]] }
  0x41   :  { %v88_v28 = vadd.f32 %v87_v9, %v84_v20  ;;  %v99_v29 = vadd.f32 %v98_v16, %v95_v21  ;;  %v110_v30 = vadd.f32 %v109_v19, %v107_v22  ;;  %v117_v31 = vmul.f32 %v382_v2, %v116_v25  ;;  %s636_s13 = sld [smem:[#allocation6 + $0x100]]  ;;  %s638_s14 = sld [smem:[#allocation7 + $0x2]] }
  0x42   :  { %v122_v32 = vmul.f32 %v121_v26, %v70_v0  ;;  %v127_v33 = vstv %s605_s29  ;;  %v131_v34 = vstv %s607_s30  ;;  %s642_s15 = sld [smem:[#allocation6 + $0x101]]  ;;  %s644_s16 = sld [smem:[#allocation6 + $0x102]]  ;;  %v136_v42 = vstv %s610_s0 }
  0x43   :  { %472 = vtanh.f32 %v88_v28  ;;  %v103_v35 = vadd.f32 %v102_v17, %v99_v29  ;;  %v114_v36 = vadd.f32 %v113_v24, %v110_v30  ;;  %v128_v37 = vmul.f32 %v381_v1, %v127_v33  ;;  %s646_s17 = sld [smem:[#allocation6 + $0x103]]  ;;  %s648_s18 = sld [smem:[#allocation6 + $0x180]] }
  0x44   :  { %v125_v38 = vadd.f32 %v124_v27, %v122_v32  ;;  %v132_v39 = vmul.f32 %v382_v2, %v131_v34  ;;  %s650_s19 = sld [smem:[#allocation7 + $0x3]]  ;;  %s652_s20 = sld [smem:[#allocation6 + $0x181]]  ;;  %v139_v43 = vstv %s612_s6  ;;  %v142_v45 = vstv %s614_s7 }
  0x45   :  { %474 = vtanh.f32 %v103_v35  ;;  %v118_v40 = vadd.f32 %v117_v31, %v114_v36  ;;  %s654_s21 = sld [smem:[#allocation6 + $0x182]]  ;;  %s656_s22 = sld [smem:[#allocation6 + $0x183]]  ;;  %v146_v46 = vstv %s616_s8  ;;  %v150_v47 = vstv %s620_s9 }
  0x46   :  { %v129_v41 = vadd.f32 %v128_v37, %v125_v38  ;;  %s658_s23 = sld [smem:[#allocation6 + $0x200]]  ;;  %s660_s24 = sld [smem:[#allocation7 + $0x4]]  ;;  %v155_v48 = vstv %s622_s10  ;;  %v158_v49 = vstv %s625_s11  ;;  %v161_v50 = vstv %s627_s3 }
  0x47   :  { %476 = vtanh.f32 %v118_v40  ;;  %s664_s25 = sld [smem:[#allocation6 + $0x201]]  ;;  %s666_s26 = sld [smem:[#allocation6 + $0x202]]  ;;  %v165_v51 = vstv %s632_s4  ;;  %v169_v52 = vstv %s634_s12  ;;  %v175_v53 = vstv %s636_s13 }
  0x48   :  { %v133_v44 = vadd.f32 %v132_v39, %v129_v41  ;;  %s671_s2 = sld [smem:[#allocation6 + $0x203]]  ;;  %s673_s1 = sld [smem:[#allocation6 + $0x280]]  ;;  %v178_v54 = vstv %s638_s14  ;;  %v181_v55 = vstv %s642_s15  ;;  %v185_v56 = vstv %s644_s16 }
  0x49   :  { %s679_s27 = sld [smem:[#allocation7 + $0x5]]  ;;  %v189_v57 = vstv %s646_s17  ;;  %v195_v58 = vstv %s648_s18  ;;  %s710_s28 = sld [smem:[#allocation6 + $0x281]] }
  0x4a   :  { %478 = vtanh.f32 %v133_v44  ;;  %v198_v59 = vstv %s650_s19  ;;  %v201_v60 = vstv %s652_s20  ;;  %s712_s29 = sld [smem:[#allocation6 + $0x282]]  ;;  %s718_s30 = sld [smem:[#allocation6 + $0x283]] }
  0x4b   :  { %v205_v61 = vstv %s654_s21  ;;  %v209_v0 = vstv %s656_s22  ;;  %s720_s0 = sld [smem:[#allocation6 + $0x300]]  ;;  %s724_s6 = sld [smem:[#allocation7 + $0x6]] }
  0x4c   :  { %v215_v62 = vstv %s658_s23  ;;  %v218_v1 = vstv %s660_s24  ;;  %s728_s7 = sld [smem:[#allocation6 + $0x301]]  ;;  %s730_s8 = sld [smem:[#allocation6 + $0x302]] }
  0x4d   :  { %v692_v63 = vpop.eup %472  ;;  %v221_v2 = vstv %s664_s25  ;;  %v225_v3 = vstv %s666_s26  ;;  %s735_s10 = sld [smem:[#allocation6 + $0x303]]  ;;  %s742_s11 = sld [smem:[#allocation6 + $0x380]] }
  0x4e   :  { %v137_v4 = vmul.f32 %v692_v63, %v136_v42  ;;  %v156_v5 = vmul.f32 %v692_v63, %v155_v48  ;;  %v176_v6 = vmul.f32 %v692_v63, %v175_v53  ;;  %v196_v7 = vmul.f32 %v692_v63, %v195_v58  ;;  %s744_s3 = sld [smem:[#allocation7 + $0x7]]  ;;  %s748_s4 = sld [smem:[#allocation6 + $0x381]] }
  0x4f   :  { %v702_v8 = vpop.eup %474  ;;  %v216_v9 = vmul.f32 %v692_v63, %v215_v62  ;;  %v229_v10 = vstv %s671_s2  ;;  %v235_v11 = vstv %s673_s1  ;;  %v238_v12 = vstv %s679_s27  ;;  %s750_s9 = sld [smem:[#allocation6 + $0x382]]  ;;  %s753_s12 = sld [smem:[#allocation6 + $0x383]] }
  0x50   :  { %v140_v13 = vadd.f32 %v139_v43, %v137_v4  ;;  %v143_v14 = vmul.f32 %v702_v8, %v142_v45  ;;  %v159_v15 = vadd.f32 %v158_v49, %v156_v5  ;;  %v162_v16 = vmul.f32 %v702_v8, %v161_v50  ;;  %s757_s13 = sld [smem:[#allocation6 + $0x400]]  ;;  %s774_s21 = sld [smem:[#allocation6 + $0x401]] }
  0x51   :  { %v714_v17 = vpop.eup %476  ;;  %v179_v18 = vadd.f32 %v178_v54, %v176_v6  ;;  %v182_v19 = vmul.f32 %v702_v8, %v181_v55  ;;  %v199_v20 = vadd.f32 %v198_v59, %v196_v7  ;;  %v202_v21 = vmul.f32 %v702_v8, %v201_v60  ;;  %s772_s20 = sld [smem:[#allocation7 + $0x8]]  ;;  %s783_s24 = sld [smem:[#allocation6 + $0x402]] }
  0x52   :  { %v144_v22 = vadd.f32 %v143_v14, %v140_v13  ;;  %v147_v23 = vmul.f32 %v714_v17, %v146_v46  ;;  %v163_v24 = vadd.f32 %v162_v16, %v159_v15  ;;  %v166_v25 = vmul.f32 %v714_v17, %v165_v51  ;;  %s785_s25 = sld [smem:[#allocation6 + $0x403]]  ;;  %s791_s26 = sld [smem:[#allocation6 + $0x480]] }
  0x53   :  { %v183_v26 = vadd.f32 %v182_v19, %v179_v18  ;;  %v186_v27 = vmul.f32 %v714_v17, %v185_v56  ;;  %v203_v28 = vadd.f32 %v202_v21, %v199_v20  ;;  %v206_v29 = vmul.f32 %v714_v17, %v205_v61  ;;  %s799_s27 = sld [smem:[#allocation7 + $0x9]]  ;;  %s850_s14 = sld [smem:[#allocation6 + $0x583]] }
  0x54   :  { %v732_v30 = vpop.eup %478  ;;  %v148_v31 = vadd.f32 %v147_v23, %v144_v22  ;;  %v167_v32 = vadd.f32 %v166_v25, %v163_v24  ;;  %v219_v33 = vadd.f32 %v218_v1, %v216_v9  ;;  %v222_v34 = vmul.f32 %v702_v8, %v221_v2 }
  0x55   :  { %v151_v35 = vmul.f32 %v732_v30, %v150_v47  ;;  %v170_v36 = vmul.f32 %v732_v30, %v169_v52  ;;  %v187_v37 = vadd.f32 %v186_v27, %v183_v26  ;;  %v190_v38 = vmul.f32 %v732_v30, %v189_v57 }
  0x56   :  { %v207_v39 = vadd.f32 %v206_v29, %v203_v28  ;;  %v210_v40 = vmul.f32 %v732_v30, %v209_v0  ;;  %v223_v41 = vadd.f32 %v222_v34, %v219_v33  ;;  %v226_v42 = vmul.f32 %v714_v17, %v225_v3 }
  0x57   :  { %v152_v43 = vadd.f32 %v151_v35, %v148_v31  ;;  %v171_v44 = vadd.f32 %v170_v36, %v167_v32  ;;  %v191_v45 = vadd.f32 %v190_v38, %v187_v37  ;;  %v230_v46 = vmul.f32 %v732_v30, %v229_v10 }
  0x58   :  { %v211_v47 = vadd.f32 %v210_v40, %v207_v39  ;;  %v227_v48 = vadd.f32 %v226_v42, %v223_v41  ;;  %v236_v49 = vmul.f32 %v692_v63, %v235_v11  ;;  %v241_v50 = vstv %s710_s28  ;;  %s801_s28 = sld [smem:[#allocation6 + $0x481]] }
  0x59   :  { %153 = vst [vmem:[%s899_s5] sm:$0x1] %v152_v43  ;;  %405 = vst [vmem:[%s899_s5 + $0x1] sm:$0x1] %v171_v44  ;;  %v242_v51 = vmul.f32 %v702_v8, %v241_v50  ;;  %v245_v52 = vstv %s712_s29  ;;  %v249_v53 = vstv %s718_s30  ;;  %s806_s29 = sld [smem:[#allocation6 + $0x482]]  ;;  %s811_s30 = sld [smem:[#allocation6 + $0x483]] }
  0x5a   :  { %411 = vst [vmem:[%s899_s5 + $0x2] sm:$0x1] %v191_v45  ;;  %v255_v54 = vstv %s720_s0  ;;  %417 = vst [vmem:[%s899_s5 + $0x3] sm:$0x1] %v211_v47  ;;  %v231_v55 = vadd.f32 %v230_v46, %v227_v48  ;;  %v239_v56 = vadd.f32 %v238_v12, %v236_v49  ;;  %v246_v57 = vmul.f32 %v714_v17, %v245_v52  ;;  %s813_s0 = sld [smem:[#allocation6 + $0x500]] }
  0x5b   :  { %v250_v58 = vmul.f32 %v732_v30, %v249_v53  ;;  %v256_v59 = vmul.f32 %v692_v63, %v255_v54  ;;  %v258_v60 = vstv %s724_s6  ;;  %v261_v61 = vstv %s728_s7  ;;  %s818_s6 = sld [smem:[#allocation7 + $0xa]]  ;;  %s820_s7 = sld [smem:[#allocation6 + $0x501]] }
  0x5c   :  { %v265_v62 = vstv %s730_s8  ;;  %423 = vst [vmem:[%s899_s5 + $0x4] sm:$0x1] %v231_v55  ;;  %v243_v0 = vadd.f32 %v242_v51, %v239_v56  ;;  %v262_v1 = vmul.f32 %v702_v8, %v261_v61  ;;  %v269_v3 = vstv %s735_s10  ;;  %s824_s8 = sld [smem:[#allocation6 + $0x502]]  ;;  %s826_s10 = sld [smem:[#allocation6 + $0x503]] }
  0x5d   :  { %v266_v2 = vmul.f32 %v714_v17, %v265_v62  ;;  %v259_v4 = vadd.f32 %v258_v60, %v256_v59  ;;  %v270_v5 = vmul.f32 %v732_v30, %v269_v3  ;;  %v275_v6 = vstv %s742_s11 }
  0x5e   :  { %v278_v7 = vstv %s744_s3  ;;  %v247_v9 = vadd.f32 %v246_v57, %v243_v0  ;;  %v276_v10 = vmul.f32 %v692_v63, %v275_v6  ;;  %v281_v11 = vstv %s748_s4  ;;  %s837_s4 = sld [smem:[#allocation6 + $0x580]] }
  0x5f   :  { %v285_v12 = vstv %s750_s9  ;;  %v263_v13 = vadd.f32 %v262_v1, %v259_v4  ;;  %v282_v14 = vmul.f32 %v702_v8, %v281_v11  ;;  %v289_v16 = vstv %s753_s12  ;;  %s839_s9 = sld [smem:[#allocation7 + $0xb]]  ;;  %s843_s12 = sld [smem:[#allocation6 + $0x581]] }
  0x60   :  { %v286_v15 = vmul.f32 %v714_v17, %v285_v12  ;;  %v251_v18 = vadd.f32 %v250_v58, %v247_v9  ;;  %v279_v19 = vadd.f32 %v278_v7, %v276_v10  ;;  %v290_v20 = vmul.f32 %v732_v30, %v289_v16 }
  0x61   :  { %v295_v21 = vstv %s757_s13  ;;  %v267_v22 = vadd.f32 %v266_v2, %v263_v13  ;;  %v298_v24 = vstv %s772_s20  ;;  %v301_v25 = vstv %s774_s21  ;;  %s848_s13 = sld [smem:[#allocation6 + $0x582]] }
  0x62   :  { %v296_v23 = vmul.f32 %v692_v63, %v295_v21  ;;  %429 = vst [vmem:[%s899_s5 + $0x5] sm:$0x1] %v251_v18  ;;  %v283_v26 = vadd.f32 %v282_v14, %v279_v19  ;;  %v302_v27 = vmul.f32 %v702_v8, %v301_v25  ;;  %v305_v28 = vstv %s783_s24 }
  0x63   :  { %v309_v29 = vstv %s785_s25  ;;  %v271_v31 = vadd.f32 %v270_v5, %v267_v22  ;;  %v306_v33 = vmul.f32 %v714_v17, %v305_v28  ;;  %v315_v36 = vstv %s791_s26 }
  0x64   :  { %v299_v32 = vadd.f32 %v298_v24, %v296_v23  ;;  %v310_v34 = vmul.f32 %v732_v30, %v309_v29  ;;  %v287_v35 = vadd.f32 %v286_v15, %v283_v26  ;;  %v318_v37 = vstv %s799_s27 }
  0x65   :  { %v321_v38 = vstv %s801_s28  ;;  %435 = vst [vmem:[%s899_s5 + $0x6] sm:$0x1] %v271_v31  ;;  %v316_v40 = vmul.f32 %v692_v63, %v315_v36  ;;  %v325_v42 = vstv %s806_s29  ;;  %v329_v45 = vstv %s811_s30 }
  0x66   :  { %v303_v39 = vadd.f32 %v302_v27, %v299_v32  ;;  %v322_v41 = vmul.f32 %v702_v8, %v321_v38  ;;  %v291_v43 = vadd.f32 %v290_v20, %v287_v35  ;;  %v326_v44 = vmul.f32 %v714_v17, %v325_v42 }
  0x67   :  { %v335_v46 = vstv %s813_s0  ;;  %v319_v48 = vadd.f32 %v318_v37, %v316_v40  ;;  %v330_v49 = vmul.f32 %v732_v30, %v329_v45  ;;  %v338_v51 = vstv %s818_s6 }
  0x68   :  { %v307_v47 = vadd.f32 %v306_v33, %v303_v39  ;;  %v336_v50 = vmul.f32 %v692_v63, %v335_v46  ;;  %441 = vst [vmem:[%s899_s5 + $0x7] sm:$0x1] %v291_v43  ;;  %v341_v52 = vstv %s820_s7  ;;  %v345_v53 = vstv %s824_s8 }
  0x69   :  { %v349_v54 = vstv %s826_s10  ;;  %v323_v56 = vadd.f32 %v322_v41, %v319_v48  ;;  %v342_v58 = vmul.f32 %v702_v8, %v341_v52  ;;  %v346_v59 = vmul.f32 %v714_v17, %v345_v53 }
  0x6a   :  { %v311_v55 = vadd.f32 %v310_v34, %v307_v47  ;;  %v339_v57 = vadd.f32 %v338_v51, %v336_v50  ;;  %v350_v60 = vmul.f32 %v732_v30, %v349_v54  ;;  %v355_v61 = vstv %s837_s4 }
  0x6b   :  { %v358_v62 = vstv %s839_s9  ;;  %v327_v0 = vadd.f32 %v326_v44, %v323_v56  ;;  %v356_v2 = vmul.f32 %v692_v63, %v355_v61  ;;  %v361_v3 = vstv %s843_s12 }
  0x6c   :  { %447 = vst [vmem:[%s899_s5 + $0x8] sm:$0x1] %v311_v55  ;;  %v343_v1 = vadd.f32 %v342_v58, %v339_v57  ;;  %v362_v4 = vmul.f32 %v702_v8, %v361_v3  ;;  %v365_v5 = vstv %s848_s13  ;;  %v369_v6 = vstv %s850_s14 }
  0x6d   :  { %v331_v7 = vadd.f32 %v330_v49, %v327_v0  ;;  %v359_v10 = vadd.f32 %v358_v62, %v356_v2  ;;  %v366_v11 = vmul.f32 %v714_v17, %v365_v5  ;;  %v370_v14 = vmul.f32 %v732_v30, %v369_v6 }
  0x6e   :  { %v347_v9 = vadd.f32 %v346_v59, %v343_v1 }
  0x6f   :  { %453 = vst [vmem:[%s899_s5 + $0x9] sm:$0x1] %v331_v7  ;;  %v363_v13 = vadd.f32 %v362_v4, %v359_v10 }
  0x70   :  { %v351_v12 = vadd.f32 %v350_v60, %v347_v9 }
  0x71   :  { %v367_v63 = vadd.f32 %v366_v11, %v363_v13 }
  0x72   :  { %459 = vst [vmem:[%s899_s5 + $0xa] sm:$0x1] %v351_v12 }
  0x73   :  { %v371_v8 = vadd.f32 %v370_v14, %v367_v63 }
  0x75   :  { %465 = vst [vmem:[%s899_s5 + $0xb] sm:$0x1] %v371_v8 }
  0x76   :  { %378 = vsyncpa [#allocation3], 1 }
  0x77   :  { %379 = vsyncpa [#allocation5], 1 }
  0x78   :  { %380 = vsyncpa [#allocation8], 1 }

</bundles_post_ra>
